<compile_context>
chip_gen: v6e
topology: v6e:2x2x1
jax: 0.10.0
libtpu: 0.0.40
codegen_flags: <defaults>
</compile_context>

<pallas_src>
import functools

import jax
import jax.numpy as jnp
from jax.experimental import pallas as pl
from jax.experimental.pallas import tpu as pltpu  # noqa: F401  (kept for TPU-specific tuning hooks)


# ---------------------------------------------------------------------------
# Kernel: adj = sigmoid(alpha2 * tanh(a1*(X@W1+b1)) @ tanh(a1*(X@W2+b2)).T)
# with the two linear layers fused into one (F, 2D) matmul.
# ---------------------------------------------------------------------------
def _adj_kernel(x_ref, w12_ref, b12_ref, adj_ref, *, alpha1, alpha2, dim):
    # One fused MXU matmul producing both node-embedding halves.
    h = jnp.dot(x_ref[...], w12_ref[...], preferred_element_type=jnp.float32)
    nv = jnp.tanh(alpha1 * (h + b12_ref[...]))
    nv1 = nv[:, :dim]
    nv2 = nv[:, dim:]
    # NT contraction on the D axis -- no explicit transpose of nv2.
    logits = jax.lax.dot_general(
        nv1, nv2, (((1,), (1,)), ((), ())),
        preferred_element_type=jnp.float32)
    adj_ref[...] = jax.nn.sigmoid(alpha2 * logits)


def _compute_dense_adj(static_feat, w12, b12, alpha1, alpha2, dim):
    n = static_feat.shape[0]
    kernel = functools.partial(_adj_kernel, alpha1=alpha1, alpha2=alpha2, dim=dim)
    # Small problem: one grid point, full-array blocks (block == array shape).
    # TODO(synk): if N grows large (>=1k), tile the (N, N) output on a 2-D grid
    # with 256-512 blocks and dimension_semantics=("parallel", "parallel"),
    # and cast nv1/nv2 to bf16 for the similarity matmul on v6e/v7x.
    return pl.pallas_call(
        kernel,
        out_shape=jax.ShapeDtypeStruct((n, n), jnp.float32),
        in_specs=[
            pl.BlockSpec(static_feat.shape, lambda: (0, 0)),
            pl.BlockSpec(w12.shape, lambda: (0, 0)),
            pl.BlockSpec(b12.shape, lambda: (0, 0)),
        ],
        out_specs=pl.BlockSpec((n, n), lambda: (0, 0)),
    )(static_feat, w12, b12)


# ---------------------------------------------------------------------------
# Forward wrapper (matches EdgeStructureLearner.forward semantics).
# ---------------------------------------------------------------------------
@functools.partial(
    jax.jit, static_argnames=("max_num_edges", "alpha1", "alpha2", "self_loops"))
def edge_structure_learner_forward(
    static_feat, w1, b1, w2, b2, *,
    max_num_edges, alpha1=0.1, alpha2=2.0, self_loops=True,
):
    n = static_feat.shape[0]
    dim = w1.shape[1]

    # Fuse the two linear layers: (F, 2D) weight, (1, 2D) bias.
    w12 = jnp.concatenate([w1, w2], axis=1)
    b12 = jnp.concatenate([b1, b2], axis=1)

    # Dense adjacency: single Pallas kernel (fused matmul + tanh + NT matmul + sigmoid).
    adj = _compute_dense_adj(static_feat, w12, b12, alpha1, alpha2, dim)

    # Top-k edge selection + mask + diagonal clamp: tiny data-dependent
    # epilogue kept in plain JAX (XLA fuses it; no second pallas_call launch,
    # no (N,N) mask HBM round-trip).  Exact-k semantics preserved.
    # TODO(synk): top-k has no clean Pallas TPU equivalent; kept in JAX.
    flat = adj.reshape(-1)
    vals, idxs = jax.lax.top_k(flat, max_num_edges)
    masked = jnp.zeros_like(flat).at[idxs].set(vals).reshape((n, n))
    if self_loops:
        eye = jnp.eye(n, dtype=bool)
        masked = jnp.where(eye, jnp.maximum(masked, 0.5), masked)
    return masked


# ---------------------------------------------------------------------------
# Main
# ---------------------------------------------------------------------------
if __name__ == "__main__":
    num_nodes = 16      # N
    xd = 8              # static feature dim
    dim = 32            # hidden dim of lin1/lin2
    max_num_edges = 40  # top-k edges kept
    alpha1, alpha2 = 0.1, 2.0

    key = jax.random.PRNGKey(0)
    k_sf, k_w1, k_b1, k_w2, k_b2 = jax.random.split(key, 5)

    # Deterministic synthetic parameters (shapes match nn.Linear(xd, dim),
    # stored transposed so the kernel does X @ W directly).
    static_feat = jax.random.normal(k_sf, (num_nodes, xd), dtype=jnp.float32)
    bound = 1.0 / float(xd) ** 0.5
    w1 = jax.random.uniform(k_w1, (xd, dim), jnp.float32, -bound, bound)
    b1 = jax.random.uniform(k_b1, (1, dim), jnp.float32, -bound, bound)
    w2 = jax.random.uniform(k_w2, (xd, dim), jnp.float32, -bound, bound)
    b2 = jax.random.uniform(k_b2, (1, dim), jnp.float32, -bound, bound)

    adj = edge_structure_learner_forward(
        static_feat, w1, b1, w2, b2,
        max_num_edges=max_num_edges, alpha1=alpha1, alpha2=alpha2,
        self_loops=True,
    )
    adj = jax.block_until_ready(adj)

    # Pure-JAX reference check (mirrors the torch module).
    nv1 = jnp.tanh(alpha1 * (static_feat @ w1 + b1))
    nv2 = jnp.tanh(alpha1 * (static_feat @ w2 + b2))
    ref = jax.nn.sigmoid(alpha2 * (nv1 @ nv2.T))
    flat = ref.reshape(-1)
    _, idxs = jax.lax.top_k(flat, max_num_edges)
    m = jnp.zeros_like(flat).at[idxs].set(1.0).reshape(ref.shape)
    ref = ref * m
    eye = jnp.eye(num_nodes, dtype=bool)
    ref = jnp.where(eye, jnp.maximum(ref, 0.5), ref)

    assert adj.shape == (num_nodes, num_nodes)
    assert jnp.allclose(adj, ref, atol=1e-5, rtol=1e-5)
    print("KERNEL_OK")
</pallas_src>

<mosaic_0001>
module attributes {stable_mosaic.version = 11 : i64} {
  func.func @_adj_kernel(%arg0: memref<16x8xf32, #tpu.memory_space<vmem>>, %arg1: memref<8x64xf32, #tpu.memory_space<vmem>>, %arg2: memref<1x64xf32, #tpu.memory_space<vmem>>, %arg3: memref<16x16xf32, #tpu.memory_space<vmem>>) attributes {dimension_semantics = [], scalar_prefetch = 0 : i64, scratch_operands = 0 : i64, tpu.core_type = #tpu.core_type<tc>} {
    %c0 = arith.constant 0 : index
    %c0_0 = arith.constant 0 : index
    %0 = vector.load %arg0[%c0, %c0_0] : memref<16x8xf32, #tpu.memory_space<vmem>>, vector<16x8xf32>
    %c0_1 = arith.constant 0 : index
    %c0_2 = arith.constant 0 : index
    %1 = vector.load %arg1[%c0_1, %c0_2] : memref<8x64xf32, #tpu.memory_space<vmem>>, vector<8x64xf32>
    %cst = arith.constant dense<0.000000e+00> : vector<16x64xf32>
    %2 = tpu.matmul %0, %1, %cst {dimension_numbers = #tpu.dot_dimension_numbers<[1], [0], [0], [1], [0, 0, 1, 1], [], []>} : vector<16x8xf32>, vector<8x64xf32>, vector<16x64xf32> -> vector<16x64xf32>
    %c0_3 = arith.constant 0 : index
    %c0_4 = arith.constant 0 : index
    %3 = vector.load %arg2[%c0_3, %c0_4] : memref<1x64xf32, #tpu.memory_space<vmem>>, vector<1x64xf32>
    %4 = vector.broadcast %3 : vector<1x64xf32> to vector<16x64xf32>
    %5 = arith.addf %2, %4 : vector<16x64xf32>
    %cst_5 = arith.constant 1.000000e-01 : f32
    %6 = vector.broadcast %cst_5 : f32 to vector<16x64xf32>
    %7 = arith.mulf %6, %5 : vector<16x64xf32>
    %8 = math.tanh %7 : vector<16x64xf32>
    %9 = vector.extract_strided_slice %8 {offsets = [0, 0], sizes = [16, 32], strides = [1, 1]} : vector<16x64xf32> to vector<16x32xf32>
    %10 = vector.extract_strided_slice %8 {offsets = [0, 32], sizes = [16, 32], strides = [1, 1]} : vector<16x64xf32> to vector<16x32xf32>
    %cst_6 = arith.constant dense<0.000000e+00> : vector<16x16xf32>
    %11 = tpu.matmul %9, %10, %cst_6 {dimension_numbers = #tpu.dot_dimension_numbers<[1], [1], [0], [0], [0, 0, 1, 0], [], []>} : vector<16x32xf32>, vector<16x32xf32>, vector<16x16xf32> -> vector<16x16xf32>
    %cst_7 = arith.constant 2.000000e+00 : f32
    %12 = vector.broadcast %cst_7 : f32 to vector<16x16xf32>
    %13 = arith.mulf %12, %11 : vector<16x16xf32>
    %14 = arith.negf %13 : vector<16x16xf32>
    %15 = math.exp %14 : vector<16x16xf32>
    %cst_8 = arith.constant 1.000000e+00 : f32
    %16 = vector.broadcast %cst_8 : f32 to vector<16x16xf32>
    %17 = arith.addf %16, %15 : vector<16x16xf32>
    %18 = arith.divf %16, %17 : vector<16x16xf32>
    %c0_9 = arith.constant 0 : index
    %c0_10 = arith.constant 0 : index
    %19 = vector.load %arg3[%c0_9, %c0_10] : memref<16x16xf32, #tpu.memory_space<vmem>>, vector<16x16xf32>
    tpu.vector_store %arg3[%c0_9, %c0_10], %18 {strides = array<i32>} : memref<16x16xf32, #tpu.memory_space<vmem>>, vector<16x16xf32>,
    return
  }
}

</mosaic_0001>

<bundles_post_ra>
// kernel: edge_structure_learner_forward.1
= control target key start
LH: loop header
LB: loop body
LE: loop exit
PB: predicated region body
PF: predicated region fallthrough
CT: control target
= control target key end

     0   :  { %vm24_vm0 = vcmask 64512   ;;  %vm116_vm1 = vcmask 261120   ;;  %vm214_vm2 = vcmask 130048   ;;  %s301_s1 = inlined_call_operand.vmem [shape: f32[8,64], index: 1, kind: input, shape index: {}]   ;;  %s302_s0 = inlined_call_operand.vmem [shape: f32[16,8], index: 0, kind: input, shape index: {}]   ;;  %s303_s2 = inlined_call_operand.vmem [shape: f32[1,64], index: 2, kind: input, shape index: {}]   ;;  %s304_s3 = inlined_call_operand.vmem [shape: f32[16,16], index: 3, kind: output, shape index: {}]  }
   0x1   :  { %v16_v0 = vld [vmem:[%s301_s1] sm:$0xff]  ;;  %v15_v2 = vld [vmem:[%s302_s0 + $0x8] sm:$0xff]  ;;  %s262_s1 = smov 96  }
   0x2   :  { %v14_v1 = vld [vmem:[%s302_s0] sm:$0xff]  ;;  %237 = vmatprep.subr.mxu0 %v16_v0 }
   0x3   :  { %239 = vmatprep.mubr.msk.f32.mxu0 %vm24_vm0, %v14_v1  ;;  %238 = vmatpush3.msra.mxu0 %v16_v0  ;;  %v221_v3 = vld [vmem:[%s303_s2] ss:$0 sm:$0xff] }
   0x4   :  { %240 = vmatmul.mubr.msk.f32.vlgmr.msra.gmra.mxu0 %vm24_vm0, %v15_v2 }
  0xc4   :  { %v241_v4 = vpop.f32.mrf.mxu0 }
  0xc5   :  { %v103_v5 = vadd.f32 %v241_v4, %v221_v3 }
  0xc6   :  { %v97_v6 = vpop.f32.mrf.mxu0 }
  0xc7   :  { %v107_v7 = vmul.f32 0.1, %v103_v5  ;;  %v98_v8 = vadd.f32 %v221_v3, %v97_v6 }
  0xc9   :  { %250 = vtanh.f32 %v107_v7  ;;  %v106_v9 = vmul.f32 0.1, %v98_v8 }
  0xcb   :  { %252 = vtanh.f32 %v106_v9 }
  0xd6   :  { %v251_v10 = vpop.eup %250 }
  0xd7   :  { %114 = vrot.lane.b32.xlu0 %v251_v10, %s262_s1 }
  0xd8   :  { %v253_v11 = vpop.eup %252 }
  0xd9   :  { %246 = vmatprep.mubr.msk.f32.mxu1 %vm116_vm1, %v253_v11 }
  0xdb   :  { %112 = vrot.lane.b32.xlu0 %v253_v11, %s262_s1 }
 0x149   :  { %v115_v12 = vpop.permute.xlu0 %114 }
 0x14a   :  { %242 = vmatprep.subr.msk.mxu1 %vm116_vm1, %v115_v12 }
 0x14b   :  { %243 = vmatpush3.xpose.msk.msra.mxu1 %vm116_vm1, %v115_v12 }
 0x14d   :  { %v113_v13 = vpop.permute.xlu0 %112 }
 0x14e   :  { %244 = vmatprep.subr.msk.mxu1 %vm116_vm1, %v113_v13 }
 0x14f   :  { %245 = vmatpush3.xpose.msk.msra.mxu1 %vm116_vm1, %v113_v13 }
 0x152   :  { %247 = vmatmul.mubr.msk.f32.vlgmr.msra.gmra.mxu1 %vm116_vm1, %v251_v10 }
 0x212   :  { %v248_v14 = vpop.f32.mrf.mxu1 }
 0x213   :  { %v229_v15 = vmul.f32 -2.0, %v248_v14 }
 0x214   :  { %v191_v16 = vpop.f32.mrf.mxu1 }
 0x215   :  { %v206_v17 = vmul.f32 1.442695, %v229_v15  ;;  %v228_v18 = vmul.f32 -2.0, %v191_v16 }
 0x217   :  { %254 = vpow2.f32 %v206_v17  ;;  %v204_v19 = vmul.f32 1.442695, %v228_v18 }
 0x219   :  { %256 = vpow2.f32 %v204_v19 }
 0x224   :  { %v255_v20 = vpop.eup %254 }
 0x225   :  { %v209_v21 = vadd.f32 1.0, %v255_v20 }
 0x226   :  { %v257_v22 = vpop.eup %256 }
 0x227   :  { %258 = vrcp.f32 %v209_v21  ;;  %v208_v23 = vadd.f32 1.0, %v257_v22 }
 0x229   :  { %260 = vrcp.f32 %v208_v23 }
 0x234   :  { %v259_v24 = vpop.eup %258 }
 0x235   :  { %216 = vst.msk [vmem:[%s304_s3 + $0x8] sm:$0xff] %vm214_vm2, %v259_v24 }
 0x236   :  { %v261_v25 = vpop.eup %260 }
 0x237   :  { %215 = vst.msk [vmem:[%s304_s3] sm:$0xff] %vm214_vm2, %v261_v25 }

</bundles_post_ra>
